<compile_context>
chip_gen: v6e
topology: v6e:2x2x1
jax: 0.10.0
libtpu: 0.0.40
codegen_flags: <defaults>
</compile_context>

<pallas_src>
import jax
import jax.numpy as jnp
from jax.experimental import pallas as pl
from jax.experimental.pallas import tpu as pltpu


def _round_up(x: int, m: int) -> int:
    return (x + m - 1) // m * m


def _cdiv(a: int, b: int) -> int:
    return (a + b - 1) // b


def _vmem_capacity_bytes() -> int:
    try:
        return int(pltpu.get_tpu_info().vmem_capacity_bytes)
    except Exception:
        return 64 * 1024 * 1024  # conservative (v7x per-core) fallback


# ----------------------------------------------------------------------------
# Kernel: grid = (M-steps, K-steps).  For each M tile, accumulate the first
# matmul over K slabs of W1 into an f32 scratch, then on the last K step apply
# bias+ReLU, run the second (fully-resident) matmul, bias+ReLU, and store.
# ----------------------------------------------------------------------------
def mlp_kernel(x_ref, w1_ref, b1_ref, w2_ref, b2_ref, o_ref, h_acc):
    k = pl.program_id(1)

    @pl.when(k == 0)
    def _init():
        h_acc[...] = jnp.zeros_like(h_acc)

    h_acc[...] += jnp.dot(x_ref[...], w1_ref[...],
                          preferred_element_type=jnp.float32)

    @pl.when(k == pl.num_programs(1) - 1)
    def _finalize():
        h = jnp.maximum(h_acc[...] + b1_ref[...], 0.0)
        h = h.astype(w2_ref.dtype)                     # bf16 for the MXU
        o = jnp.dot(h, w2_ref[...], preferred_element_type=jnp.float32)
        o = jnp.maximum(o + b2_ref[...], 0.0)
        o_ref[...] = o.astype(o_ref.dtype)


# ----------------------------------------------------------------------------
# One-time parameter preparation (pad to lane-aligned shapes, cast to bf16).
# ----------------------------------------------------------------------------
def prepare_params(w1, b1, w2, b2):
    flat, hidden = w1.shape
    assert w2.shape == (hidden, hidden), "second layer must be hidden x hidden"

    hid_p = _round_up(hidden, 128)
    flat_128 = _round_up(flat, 128)

    # Keep W1 fully resident only while it stays a modest fraction of VMEM;
    # otherwise stream it in TK-wide slabs over a K grid axis.
    w1_resident_budget = _vmem_capacity_bytes() // 4
    if flat_128 * hid_p * 2 <= w1_resident_budget:
        tk = flat_128
    else:
        tk = 512                                     # streamed slab (mult. of 128)
    flat_p = _round_up(flat, tk)

    w1p = jnp.zeros((flat_p, hid_p), jnp.bfloat16).at[:flat, :hidden].set(
        jnp.asarray(w1).astype(jnp.bfloat16))
    w2p = jnp.zeros((hid_p, hid_p), jnp.bfloat16).at[:hidden, :hidden].set(
        jnp.asarray(w2).astype(jnp.bfloat16))
    b1p = jnp.zeros((1, hid_p), jnp.float32).at[:, :hidden].set(
        jnp.asarray(b1, jnp.float32).reshape(1, -1))
    b2p = jnp.zeros((1, hid_p), jnp.float32).at[:, :hidden].set(
        jnp.asarray(b2, jnp.float32).reshape(1, -1))

    meta = dict(flat=flat, hidden=hidden, flat_p=flat_p, hid_p=hid_p, tk=tk)
    return (w1p, b1p, w2p, b2p), meta


# ----------------------------------------------------------------------------
# Forward pass.
# ----------------------------------------------------------------------------
def mlp_forward(x, prepared, *, out_dtype=jnp.float32):
    """x: (B, sample_size, in_dim).  Returns (B, hidden_dim) in out_dtype."""
    (w1p, b1p, w2p, b2p), meta = prepared
    flat, hidden = meta["flat"], meta["hidden"]
    flat_p, hid_p, tk = meta["flat_p"], meta["hid_p"], meta["tk"]

    B = x.shape[0]
    x_flat = x.reshape(B, -1)                          # == torch reshape(B, -1)
    assert x_flat.shape[1] == flat, "x inner dims must equal in_dim*sample_size"

    vmem_cap = _vmem_capacity_bytes()
    out_itemsize = jnp.dtype(out_dtype).itemsize
    k_steps = flat_p // tk

    # --- M (batch) tiling: bf16-packed (mult. of 16), generation-aware cap,
    # and >= 2 grid steps when possible so v7x's two TensorCores both work.
    b16 = _round_up(B, 16)
    tm_cap = 512 if vmem_cap >= 96 * 1024 * 1024 else 256
    tm = min(tm_cap, b16)
    if b16 >= 32 and b16 // tm < 2:
        tm = _round_up(_cdiv(b16, 2), 16)

    def est_bytes(tm_):
        w1_bufs = 2 if k_steps > 1 else 1
        return (2 * tm_ * tk * 2                      # x tile (bf16, 2 bufs)
                + w1_bufs * tk * hid_p * 2            # W1 slab(s)
                + hid_p * hid_p * 2                   # W2 (single-buffered)
                + 2 * hid_p * 4                       # biases
                + 2 * tm_ * hid_p * out_itemsize      # out tile (2 bufs)
                + tm_ * hid_p * 4                     # h accumulator scratch
                + 2 * tm_ * hid_p * 4)                # f32 intermediates

    vmem_target = int(0.70 * vmem_cap)
    while tm > 16 and est_bytes(tm) > vmem_target:
        tm = max(16, _round_up(tm // 2, 16))

    B_p = _round_up(b16, tm)
    m_steps = B_p // tm
    vmem_limit = int(min(int(0.85 * vmem_cap),
                         max(2 * est_bytes(tm), 8 * 1024 * 1024)))

    # Per-call x pad + bf16 cast (zero padding is mathematically inert).
    xp = jnp.zeros((B_p, flat_p), jnp.bfloat16).at[:B, :flat].set(
        x_flat.astype(jnp.bfloat16))

    cost = pl.CostEstimate(
        flops=2 * B_p * flat_p * hid_p + 2 * B_p * hid_p * hid_p,
        transcendentals=0,
        bytes_accessed=(B_p * flat_p * 2 + flat_p * hid_p * 2
                        + hid_p * hid_p * 2 + 2 * hid_p * 4
                        + B_p * hid_p * out_itemsize),
    )

    def build(single_buffer_resident: bool):
        res_kw = ({"pipeline_mode": pl.Buffered(1)}
                  if single_buffer_resident else {})
        w1_kw = res_kw if k_steps == 1 else {}        # W1 is constant-index iff 1 K step
        grid_spec = pltpu.PrefetchScalarGridSpec(
            num_scalar_prefetch=0,
            grid=(m_steps, k_steps),
            in_specs=[
                pl.BlockSpec((tm, tk), lambda i, k: (i, k)),               # x tile
                pl.BlockSpec((tk, hid_p), lambda i, k: (k, 0), **w1_kw),   # W1 slab
                pl.BlockSpec((1, hid_p), lambda i, k: (0, 0), **res_kw),   # b1
                pl.BlockSpec((hid_p, hid_p), lambda i, k: (0, 0), **res_kw),  # W2
                pl.BlockSpec((1, hid_p), lambda i, k: (0, 0), **res_kw),   # b2
            ],
            out_specs=pl.BlockSpec((tm, hid_p), lambda i, k: (i, 0)),
            scratch_shapes=[pltpu.VMEM((tm, hid_p), jnp.float32)],
        )
        return pl.pallas_call(
            mlp_kernel,
            out_shape=jax.ShapeDtypeStruct((B_p, hid_p), out_dtype),
            grid_spec=grid_spec,
            compiler_params=pltpu.CompilerParams(
                dimension_semantics=("parallel", "arbitrary"),
                vmem_limit_bytes=vmem_limit,
            ),
            cost_estimate=cost,
        )

    try:
        out = build(True)(xp, w1p, b1p, w2p, b2p)
    except Exception:
        # Fallback for Pallas builds without single-buffer pipeline_mode support.
        out = build(False)(xp, w1p, b1p, w2p, b2p)

    return out[:B, :hidden]


# ----------------------------------------------------------------------------
# Deterministic init mimicking nn.Linear's uniform(-1/sqrt(fan_in), ...).
# ----------------------------------------------------------------------------
def init_params(key, in_dim, sample_size, hidden_dim):
    flat = in_dim * sample_size
    k1, k2, k3, k4 = jax.random.split(key, 4)
    lim1 = 1.0 / jnp.sqrt(flat)
    lim2 = 1.0 / jnp.sqrt(hidden_dim)
    # stored as (in, out): kernel computes x @ W (torch stores (out, in))
    w1 = jax.random.uniform(k1, (flat, hidden_dim), jnp.float32, -lim1, lim1)
    b1 = jax.random.uniform(k2, (1, hidden_dim), jnp.float32, -lim1, lim1)
    w2 = jax.random.uniform(k3, (hidden_dim, hidden_dim), jnp.float32, -lim2, lim2)
    b2 = jax.random.uniform(k4, (1, hidden_dim), jnp.float32, -lim2, lim2)
    return w1, b1, w2, b2


if __name__ == "__main__":
    # Small correctness smoke test (real perf validation needs M,N,K >= 512).
    B, in_dim, sample_size, hidden_dim = 2, 4, 8, 32
    key = jax.random.PRNGKey(0)
    kx, kp = jax.random.split(key)
    x = jax.random.normal(kx, (B, sample_size, in_dim), jnp.float32)
    w1, b1, w2, b2 = init_params(kp, in_dim, sample_size, hidden_dim)

    prepared = prepare_params(w1, b1, w2, b2)        # one-time weight prep
    out = mlp_forward(x, prepared)
    jax.block_until_ready(out)
    assert out.shape == (B, hidden_dim)

    # Reference in plain JAX using the same bf16-input / f32-accumulate recipe.
    x_flat = x.reshape(B, -1)
    ref_h = jnp.maximum(
        jnp.dot(x_flat.astype(jnp.bfloat16), w1.astype(jnp.bfloat16),
                preferred_element_type=jnp.float32) + b1, 0.0)
    ref = jnp.maximum(
        jnp.dot(ref_h.astype(jnp.bfloat16), w2.astype(jnp.bfloat16),
                preferred_element_type=jnp.float32) + b2, 0.0)
    assert jnp.allclose(out, ref, atol=2e-2, rtol=2e-2), "mismatch vs reference"

    print("KERNEL_OK")
</pallas_src>

<mosaic_0001>
module attributes {stable_mosaic.version = 11 : i64} {
  func.func @mlp_kernel(%arg0: i32, %arg1: i32, %arg2: memref<16x128xbf16, #tpu.memory_space<vmem>>, %arg3: memref<128x128xbf16, #tpu.memory_space<vmem>>, %arg4: memref<1x128xf32, #tpu.memory_space<vmem>>, %arg5: memref<128x128xbf16, #tpu.memory_space<vmem>>, %arg6: memref<1x128xf32, #tpu.memory_space<vmem>>, %arg7: memref<16x128xf32, #tpu.memory_space<vmem>>, %arg8: memref<16x128xf32, #tpu.memory_space<vmem>>) attributes {dimension_semantics = [#tpu.dimension_semantics<parallel>, #tpu.dimension_semantics<arbitrary>], iteration_bounds = array<i64: 1, 1>, scalar_prefetch = 0 : i64, scratch_operands = 1 : i64, tpu.core_type = #tpu.core_type<tc>, window_params = [{transform_indices = @transform_0, window_bounds = array<i64: 16, 128>}, {pipeline_mode = #tpu.pipeline_mode<synchronous>, transform_indices = @transform_1, window_bounds = array<i64: 128, 128>}, {pipeline_mode = #tpu.pipeline_mode<synchronous>, transform_indices = @transform_2, window_bounds = array<i64: 1, 128>}, {pipeline_mode = #tpu.pipeline_mode<synchronous>, transform_indices = @transform_3, window_bounds = array<i64: 128, 128>}, {pipeline_mode = #tpu.pipeline_mode<synchronous>, transform_indices = @transform_4, window_bounds = array<i64: 1, 128>}, {transform_indices = @transform_5, window_bounds = array<i64: 16, 128>}]} {
    %c0_i32 = arith.constant 0 : i32
    %0 = arith.cmpi eq, %arg1, %c0_i32 : i32
    %1 = arith.extui %0 : i1 to i32
    %c0_i32_0 = arith.constant 0 : i32
    %2 = arith.cmpi ne, %1, %c0_i32_0 : i32
    scf.if %2 {
      %cst_10 = arith.constant 0.000000e+00 : f32
      %12 = vector.broadcast %cst_10 : f32 to vector<16x128xf32>
      %c0_11 = arith.constant 0 : index
      %c0_12 = arith.constant 0 : index
      %13 = vector.load %arg8[%c0_11, %c0_12] : memref<16x128xf32, #tpu.memory_space<vmem>>, vector<16x128xf32>
      tpu.vector_store %arg8[%c0_11, %c0_12], %12 {strides = array<i32>} : memref<16x128xf32, #tpu.memory_space<vmem>>, vector<16x128xf32>,
    } else {
    }
    %c0 = arith.constant 0 : index
    %c0_1 = arith.constant 0 : index
    %3 = vector.load %arg8[%c0, %c0_1] : memref<16x128xf32, #tpu.memory_space<vmem>>, vector<16x128xf32>
    %c0_2 = arith.constant 0 : index
    %c0_3 = arith.constant 0 : index
    %4 = vector.load %arg2[%c0_2, %c0_3] : memref<16x128xbf16, #tpu.memory_space<vmem>>, vector<16x128xbf16>
    %c0_4 = arith.constant 0 : index
    %c0_5 = arith.constant 0 : index
    %5 = vector.load %arg3[%c0_4, %c0_5] : memref<128x128xbf16, #tpu.memory_space<vmem>>, vector<128x128xbf16>
    %cst = arith.constant dense<0.000000e+00> : vector<16x128xf32>
    %6 = tpu.matmul %4, %5, %cst {dimension_numbers = #tpu.dot_dimension_numbers<[1], [0], [0], [1], [0, 0, 1, 1], [], []>} : vector<16x128xbf16>, vector<128x128xbf16>, vector<16x128xf32> -> vector<16x128xf32>
    %7 = arith.addf %3, %6 : vector<16x128xf32>
    %c0_6 = arith.constant 0 : index
    %c0_7 = arith.constant 0 : index
    %8 = vector.load %arg8[%c0_6, %c0_7] : memref<16x128xf32, #tpu.memory_space<vmem>>, vector<16x128xf32>
    tpu.vector_store %arg8[%c0_6, %c0_7], %7 {strides = array<i32>} : memref<16x128xf32, #tpu.memory_space<vmem>>, vector<16x128xf32>,
    %c0_i32_8 = arith.constant 0 : i32
    %9 = arith.cmpi eq, %arg1, %c0_i32_8 : i32
    %10 = arith.extui %9 : i1 to i32
    %c0_i32_9 = arith.constant 0 : i32
    %11 = arith.cmpi ne, %10, %c0_i32_9 : i32
    scf.if %11 {
      %c0_10 = arith.constant 0 : index
      %c0_11 = arith.constant 0 : index
      %12 = vector.load %arg8[%c0_10, %c0_11] : memref<16x128xf32, #tpu.memory_space<vmem>>, vector<16x128xf32>
      %c0_12 = arith.constant 0 : index
      %c0_13 = arith.constant 0 : index
      %13 = vector.load %arg4[%c0_12, %c0_13] : memref<1x128xf32, #tpu.memory_space<vmem>>, vector<1x128xf32>
      %14 = vector.broadcast %13 : vector<1x128xf32> to vector<16x128xf32>
      %15 = arith.addf %12, %14 : vector<16x128xf32>
      %cst_14 = arith.constant 0.000000e+00 : f32
      %16 = vector.broadcast %cst_14 : f32 to vector<16x128xf32>
      %17 = arith.maximumf %15, %16 : vector<16x128xf32>
      %18 = arith.truncf %17 : vector<16x128xf32> to vector<16x128xbf16>
      %c0_15 = arith.constant 0 : index
      %c0_16 = arith.constant 0 : index
      %19 = vector.load %arg5[%c0_15, %c0_16] : memref<128x128xbf16, #tpu.memory_space<vmem>>, vector<128x128xbf16>
      %cst_17 = arith.constant dense<0.000000e+00> : vector<16x128xf32>
      %20 = tpu.matmul %18, %19, %cst_17 {dimension_numbers = #tpu.dot_dimension_numbers<[1], [0], [0], [1], [0, 0, 1, 1], [], []>} : vector<16x128xbf16>, vector<128x128xbf16>, vector<16x128xf32> -> vector<16x128xf32>
      %c0_18 = arith.constant 0 : index
      %c0_19 = arith.constant 0 : index
      %21 = vector.load %arg6[%c0_18, %c0_19] : memref<1x128xf32, #tpu.memory_space<vmem>>, vector<1x128xf32>
      %22 = vector.broadcast %21 : vector<1x128xf32> to vector<16x128xf32>
      %23 = arith.addf %20, %22 : vector<16x128xf32>
      %cst_20 = arith.constant 0.000000e+00 : f32
      %24 = vector.broadcast %cst_20 : f32 to vector<16x128xf32>
      %25 = arith.maximumf %23, %24 : vector<16x128xf32>
      %c0_21 = arith.constant 0 : index
      %c0_22 = arith.constant 0 : index
      %26 = vector.load %arg7[%c0_21, %c0_22] : memref<16x128xf32, #tpu.memory_space<vmem>>, vector<16x128xf32>
      tpu.vector_store %arg7[%c0_21, %c0_22], %25 {strides = array<i32>} : memref<16x128xf32, #tpu.memory_space<vmem>>, vector<16x128xf32>,
    } else {
    }
    return
  }
  func.func @transform_0(%arg0: i32, %arg1: i32) -> (i32, i32) {
    %c0_i32 = arith.constant 0 : i32
    return %arg0, %arg1 : i32, i32
  }
  func.func @transform_1(%arg0: i32, %arg1: i32) -> (i32, i32) {
    %c0_i32 = arith.constant 0 : i32
    %c0_i32_0 = arith.constant 0 : i32
    return %arg1, %c0_i32 : i32, i32
  }
  func.func @transform_2(%arg0: i32, %arg1: i32) -> (i32, i32) {
    %c0_i32 = arith.constant 0 : i32
    %c0_i32_0 = arith.constant 0 : i32
    %c0_i32_1 = arith.constant 0 : i32
    return %c0_i32, %c0_i32_0 : i32, i32
  }
  func.func @transform_3(%arg0: i32, %arg1: i32) -> (i32, i32) {
    %c0_i32 = arith.constant 0 : i32
    %c0_i32_0 = arith.constant 0 : i32
    %c0_i32_1 = arith.constant 0 : i32
    return %c0_i32, %c0_i32_0 : i32, i32
  }
  func.func @transform_4(%arg0: i32, %arg1: i32) -> (i32, i32) {
    %c0_i32 = arith.constant 0 : i32
    %c0_i32_0 = arith.constant 0 : i32
    %c0_i32_1 = arith.constant 0 : i32
    return %c0_i32, %c0_i32_0 : i32, i32
  }
  func.func @transform_5(%arg0: i32, %arg1: i32) -> (i32, i32) {
    %c0_i32 = arith.constant 0 : i32
    %c0_i32_0 = arith.constant 0 : i32
    return %arg0, %c0_i32 : i32, i32
  }
}

module attributes {stable_mosaic.version = 11 : i64} {
  func.func @mlp_kernel(%arg0: i32, %arg1: i32, %arg2: memref<16x128xbf16, #tpu.memory_space<vmem>>, %arg3: memref<128x128xbf16, #tpu.memory_space<vmem>>, %arg4: memref<1x128xf32, #tpu.memory_space<vmem>>, %arg5: memref<128x128xbf16, #tpu.memory_space<vmem>>, %arg6: memref<1x128xf32, #tpu.memory_space<vmem>>, %arg7: memref<16x128xf32, #tpu.memory_space<vmem>>, %arg8: memref<16x128xf32, #tpu.memory_space<vmem>>) attributes {dimension_semantics = [#tpu.dimension_semantics<parallel>, #tpu.dimension_semantics<arbitrary>], iteration_bounds = array<i64: 1, 1>, scalar_prefetch = 0 : i64, scratch_operands = 1 : i64, tpu.core_type = #tpu.core_type<tc>, window_params = [{transform_indices = @transform_0, window_bounds = array<i64: 16, 128>}, {transform_indices = @transform_1, window_bounds = array<i64: 128, 128>}, {pipeline_mode = #tpu.pipeline_mode<synchronous>, transform_indices = @transform_2, window_bounds = array<i64: 1, 128>}, {pipeline_mode = #tpu.pipeline_mode<synchronous>, transform_indices = @transform_3, window_bounds = array<i64: 128, 128>}, {pipeline_mode = #tpu.pipeline_mode<synchronous>, transform_indices = @transform_4, window_bounds = array<i64: 1, 128>}, {transform_indices = @transform_5, window_bounds = array<i64: 16, 128>}]} {
    %c0_i32 = arith.constant 0 : i32
    %0 = arith.cmpi eq, %arg1, %c0_i32 : i32
    %1 = arith.extui %0 : i1 to i32
    %c0_i32_0 = arith.constant 0 : i32
    %2 = arith.cmpi ne, %1, %c0_i32_0 : i32
    scf.if %2 {
      %cst_10 = arith.constant 0.000000e+00 : f32
      %12 = vector.broadcast %cst_10 : f32 to vector<16x128xf32>
      %c0_11 = arith.constant 0 : index
      %c0_12 = arith.constant 0 : index
      %13 = vector.load %arg8[%c0_11, %c0_12] : memref<16x128xf32, #tpu.memory_space<vmem>>, vector<16x128xf32>
      tpu.vector_store %arg8[%c0_11, %c0_12], %12 {strides = array<i32>} : memref<16x128xf32, #tpu.memory_space<vmem>>, vector<16x128xf32>,
    } else {
    }
    %c0 = arith.constant 0 : index
    %c0_1 = arith.constant 0 : index
    %3 = vector.load %arg8[%c0, %c0_1] : memref<16x128xf32, #tpu.memory_space<vmem>>, vector<16x128xf32>
    %c0_2 = arith.constant 0 : index
    %c0_3 = arith.constant 0 : index
    %4 = vector.load %arg2[%c0_2, %c0_3] : memref<16x128xbf16, #tpu.memory_space<vmem>>, vector<16x128xbf16>
    %c0_4 = arith.constant 0 : index
    %c0_5 = arith.constant 0 : index
    %5 = vector.load %arg3[%c0_4, %c0_5] : memref<128x128xbf16, #tpu.memory_space<vmem>>, vector<128x128xbf16>
    %cst = arith.constant dense<0.000000e+00> : vector<16x128xf32>
    %6 = tpu.matmul %4, %5, %cst {dimension_numbers = #tpu.dot_dimension_numbers<[1], [0], [0], [1], [0, 0, 1, 1], [], []>} : vector<16x128xbf16>, vector<128x128xbf16>, vector<16x128xf32> -> vector<16x128xf32>
    %7 = arith.addf %3, %6 : vector<16x128xf32>
    %c0_6 = arith.constant 0 : index
    %c0_7 = arith.constant 0 : index
    %8 = vector.load %arg8[%c0_6, %c0_7] : memref<16x128xf32, #tpu.memory_space<vmem>>, vector<16x128xf32>
    tpu.vector_store %arg8[%c0_6, %c0_7], %7 {strides = array<i32>} : memref<16x128xf32, #tpu.memory_space<vmem>>, vector<16x128xf32>,
    %c0_i32_8 = arith.constant 0 : i32
    %9 = arith.cmpi eq, %arg1, %c0_i32_8 : i32
    %10 = arith.extui %9 : i1 to i32
    %c0_i32_9 = arith.constant 0 : i32
    %11 = arith.cmpi ne, %10, %c0_i32_9 : i32
    scf.if %11 {
      %c0_10 = arith.constant 0 : index
      %c0_11 = arith.constant 0 : index
      %12 = vector.load %arg8[%c0_10, %c0_11] : memref<16x128xf32, #tpu.memory_space<vmem>>, vector<16x128xf32>
      %c0_12 = arith.constant 0 : index
      %c0_13 = arith.constant 0 : index
      %13 = vector.load %arg4[%c0_12, %c0_13] : memref<1x128xf32, #tpu.memory_space<vmem>>, vector<1x128xf32>
      %14 = vector.broadcast %13 : vector<1x128xf32> to vector<16x128xf32>
      %15 = arith.addf %12, %14 : vector<16x128xf32>
      %cst_14 = arith.constant 0.000000e+00 : f32
      %16 = vector.broadcast %cst_14 : f32 to vector<16x128xf32>
      %17 = arith.maximumf %15, %16 : vector<16x128xf32>
      %18 = arith.truncf %17 : vector<16x128xf32> to vector<16x128xbf16>
      %c0_15 = arith.constant 0 : index
      %c0_16 = arith.constant 0 : index
      %19 = vector.load %arg5[%c0_15, %c0_16] : memref<128x128xbf16, #tpu.memory_space<vmem>>, vector<128x128xbf16>
      %cst_17 = arith.constant dense<0.000000e+00> : vector<16x128xf32>
      %20 = tpu.matmul %18, %19, %cst_17 {dimension_numbers = #tpu.dot_dimension_numbers<[1], [0], [0], [1], [0, 0, 1, 1], [], []>} : vector<16x128xbf16>, vector<128x128xbf16>, vector<16x128xf32> -> vector<16x128xf32>
      %c0_18 = arith.constant 0 : index
      %c0_19 = arith.constant 0 : index
      %21 = vector.load %arg6[%c0_18, %c0_19] : memref<1x128xf32, #tpu.memory_space<vmem>>, vector<1x128xf32>
      %22 = vector.broadcast %21 : vector<1x128xf32> to vector<16x128xf32>
      %23 = arith.addf %20, %22 : vector<16x128xf32>
      %cst_20 = arith.constant 0.000000e+00 : f32
      %24 = vector.broadcast %cst_20 : f32 to vector<16x128xf32>
      %25 = arith.maximumf %23, %24 : vector<16x128xf32>
      %c0_21 = arith.constant 0 : index
      %c0_22 = arith.constant 0 : index
      %26 = vector.load %arg7[%c0_21, %c0_22] : memref<16x128xf32, #tpu.memory_space<vmem>>, vector<16x128xf32>
      tpu.vector_store %arg7[%c0_21, %c0_22], %25 {strides = array<i32>} : memref<16x128xf32, #tpu.memory_space<vmem>>, vector<16x128xf32>,
    } else {
    }
    return
  }
  func.func @transform_0(%arg0: i32, %arg1: i32) -> (i32, i32) {
    %c0_i32 = arith.constant 0 : i32
    return %arg0, %arg1 : i32, i32
  }
  func.func @transform_1(%arg0: i32, %arg1: i32) -> (i32, i32) {
    %c0_i32 = arith.constant 0 : i32
    %c0_i32_0 = arith.constant 0 : i32
    return %arg1, %c0_i32 : i32, i32
  }
  func.func @transform_2(%arg0: i32, %arg1: i32) -> (i32, i32) {
    %c0_i32 = arith.constant 0 : i32
    %c0_i32_0 = arith.constant 0 : i32
    %c0_i32_1 = arith.constant 0 : i32
    return %c0_i32, %c0_i32_0 : i32, i32
  }
  func.func @transform_3(%arg0: i32, %arg1: i32) -> (i32, i32) {
    %c0_i32 = arith.constant 0 : i32
    %c0_i32_0 = arith.constant 0 : i32
    %c0_i32_1 = arith.constant 0 : i32
    return %c0_i32, %c0_i32_0 : i32, i32
  }
  func.func @transform_4(%arg0: i32, %arg1: i32) -> (i32, i32) {
    %c0_i32 = arith.constant 0 : i32
    %c0_i32_0 = arith.constant 0 : i32
    %c0_i32_1 = arith.constant 0 : i32
    return %c0_i32, %c0_i32_0 : i32, i32
  }
  func.func @transform_5(%arg0: i32, %arg1: i32) -> (i32, i32) {
    %c0_i32 = arith.constant 0 : i32
    %c0_i32_0 = arith.constant 0 : i32
    return %arg0, %c0_i32 : i32, i32
  }
}

</mosaic_0001>

<bundles_post_ra>
// kernel: tpu_custom_call.1
= control target key start
LH: loop header
LB: loop body
LE: loop exit
PB: predicated region body
PF: predicated region fallthrough
CT: control target
= control target key end

     0   :  { %10 = vsyncpa [#allocation4], 0  ;;  %s587_s0 = inlined_call_operand.hbm [shape: bf16[16,128], index: 0, kind: input, shape index: {}]   ;;  %s588_s1 = inlined_call_operand.hbm [shape: bf16[128,128], index: 1, kind: input, shape index: {}]   ;;  %s589_s2 = inlined_call_operand.vmem [shape: f32[1,128], index: 2, kind: input, shape index: {}]   ;;  %s590_s3 = inlined_call_operand.hbm [shape: bf16[128,128], index: 3, kind: input, shape index: {}]   ;;  %s591_s4 = inlined_call_operand.vmem [shape: f32[1,128], index: 4, kind: input, shape index: {}]   ;;  %s592_s5 = inlined_call_operand.hbm [shape: f32[16,128], index: 5, kind: output, shape index: {}]  }
   0x1   :  { %11 = vsyncpa [#allocation7], 0 }
   0x2   :  { %12 = vsyncpa [#allocation5], 0  ;;  %s529_s18 = smov [#allocation6]   ;;  %s530_s20 = smov [#allocation3]  }
   0x3   :  { %s30_s19 = sshll.u32 %s529_s18, 4  ;;  %s18_s21 = sshll.u32 %s530_s20, 4  ;;  %s31_s19 = int_to_ptr.vmem [resolvable:$true] %s30_s19  ;;  %s19_s21 = int_to_ptr.vmem [resolvable:$true] %s18_s21 }
   0x4   :  { %s451_s22 = scalar_lea.vmem %s31_s19, 1024  ;;  %p456_p1 = scmp.lt.s32.totalorder %s31_s19, %s31_s19 }
   0x5   :  { %p452_p0 = scmp.ne.s32.totalorder %s31_s19, %s451_s22  ;;  %p457_p2 = scmp.lt.s32.totalorder %s451_s22, %s451_s22 }
   0x7   :  { %p458_p3 = por %p457_p2, %p456_p1 }
   0x9   :  { %p459_p4 = pnand %p458_p3, %p452_p0 }
   0xb   :  { %462 = shalt.err (!%p459_p4)
}
   0xc   :  { %s531_s23 = smov 64   ;;  %s532_s24 = smov 4  }
   0xd   :  { %36 = dma.hbm_to_vmem [thread:$0]  %s588_s1, 1024, %s31_s19, [#allocation7], %s531_s23, %s531_s23, %s532_s24  }
   0xe   :  { %s471_s27 = scalar_lea.vmem %s19_s21, 128  ;;  %p476_p6 = scmp.lt.s32.totalorder %s19_s21, %s19_s21 }
   0xf   :  { %p472_p5 = scmp.ne.s32.totalorder %s19_s21, %s471_s27  ;;  %p477_p7 = scmp.lt.s32.totalorder %s471_s27, %s471_s27 }
  0x11   :  { %p478_p8 = por %p477_p7, %p476_p6 }
  0x13   :  { %p479_p9 = pnand %p478_p8, %p472_p5 }
  0x15   :  { %482 = shalt.err (!%p479_p9)
}
  0x16   :  { %24 = dma.hbm_to_vmem [thread:$0]  %s587_s0, 128, %s19_s21, [#allocation4], %s531_s23, %s531_s23, %s532_s24  }
  0x17   :  { %s533_s30 = smov [#allocation8]  }
  0x18   :  { %s44_s6 = sshll.u32 %s533_s30, 4  ;;  %s45_s6 = int_to_ptr.vmem [resolvable:$true] %s44_s6 }
  0x19   :  { %s491_s7 = scalar_lea.vmem %s45_s6, 1024  ;;  %p496_p11 = scmp.lt.s32.totalorder %s45_s6, %s45_s6 }
  0x1a   :  { %p492_p10 = scmp.ne.s32.totalorder %s45_s6, %s491_s7  ;;  %p497_p12 = scmp.lt.s32.totalorder %s491_s7, %s491_s7 }
  0x1c   :  { %p498_p13 = por %p497_p12, %p496_p11 }
  0x1e   :  { %p499_p0 = pnand %p498_p13, %p492_p10 }
  0x20   :  { %502 = shalt.err (!%p499_p0)
}
  0x21   :  { %50 = dma.hbm_to_vmem [thread:$0]  %s590_s3, 1024, %s45_s6, [#allocation7], %s531_s23, %s531_s23, %s532_s24  }
  0x22   :  { %523 = dma.done.wait [#allocation4], 128  }
  0x23   :  { %524 = vsyncadd [#allocation4], 4294967168 }
  0x24   :  { %525 = dma.done.wait [#allocation7], 2048  }
  0x25   :  { %526 = vsyncadd [#allocation7], 4294965248  ;;  %v534_v0 = vmov 0.0   ;;  %vm535_vm0 = vmmov 0   ;;  %v426_v1 = vld [vmem:[#allocation6 + $0x38] sm:$0xff]   ;;  %v427_v2 = vld [vmem:[#allocation6 + $0x30] sm:$0xff]  }
  0x26   :  { %376 = vmatprep.subr.bf16.mxu0 %v534_v0  ;;  %392 = vmatprep.mubr.msk.bf16.mxu0 %vm535_vm0, %v534_v0  ;;  %v428_v3 = vld [vmem:[#allocation6 + $0x28] sm:$0xff]   ;;  %v435_v4 = vld [vmem:[#allocation8 + $0x38] sm:$0xff]   ;;  %v429_v5 = vld [vmem:[#allocation6 + $0x20] sm:$0xff]   ;;  %s536_s11 = smov [#allocation9]  }
  0x27   :  { %396 = vmatprep.subr.bf16.mxu1 %v534_v0  ;;  %412 = vmatprep.mubr.msk.bf16.mxu1 %vm535_vm0, %v534_v0  ;;  %v436_v6 = vld [vmem:[#allocation8 + $0x30] sm:$0xff]   ;;  %v430_v7 = vld [vmem:[#allocation6 + $0x18] sm:$0xff]   ;;  %v437_v8 = vld [vmem:[#allocation8 + $0x28] sm:$0xff]   ;;  %s326_s12 = sshll.u32 %s536_s11, 4  ;;  %s327_s12 = int_to_ptr.vmem [resolvable:$true] %s326_s12 }
  0x28   :  { %377 = vmatpush3.bf16.msra.mxu0 %v426_v1  ;;  %397 = vmatpush3.bf16.msra.mxu1 %v435_v4  ;;  %v431_v9 = vld [vmem:[#allocation6 + $0x10] sm:$0xff]   ;;  %v438_v10 = vld [vmem:[#allocation8 + $0x20] sm:$0xff]   ;;  %v432_v11 = vld [vmem:[#allocation6 + $0x8] sm:$0xff]   ;;  %p508_p2 = scmp.lt.s32.totalorder %s327_s12, %s327_s12 }
  0x29   :  { %378 = vmatprep.subr.bf16.mxu0 %v534_v0  ;;  %398 = vmatprep.subr.bf16.mxu1 %v534_v0  ;;  %v439_v12 = vld [vmem:[#allocation8 + $0x18] sm:$0xff]   ;;  %v433_v13 = vld [vmem:[#allocation6] sm:$0xff]   ;;  %v440_v15 = vld [vmem:[#allocation8 + $0x10] sm:$0xff]  }
  0x2a   :  { %v434_v14 = vld [vmem:[#allocation3] sm:$0xff]   ;;  %v441_v16 = vld [vmem:[#allocation8 + $0x8] sm:$0xff]   ;;  %v442_v17 = vld [vmem:[#allocation8] sm:$0xff]  }
  0x2b   :  { %v348_v19 = vld [vmem:[%s589_s2] ss:$0 sm:$0xff]  ;;  %s503_s2 = scalar_lea.vmem %s327_s12, 256 }
  0x2c   :  { %379 = vmatpush3.bf16.msra.mxu0 %v427_v2  ;;  %399 = vmatpush3.bf16.msra.mxu1 %v436_v6  ;;  %v349_v28 = vld [vmem:[%s591_s4] ss:$0 sm:$0xff]  ;;  %p504_p1 = scmp.ne.s32.totalorder %s327_s12, %s503_s2  ;;  %p509_p3 = scmp.lt.s32.totalorder %s503_s2, %s503_s2 }
  0x2d   :  { %380 = vmatprep.subr.bf16.mxu0 %v534_v0  ;;  %400 = vmatprep.subr.bf16.mxu1 %v534_v0 }
  0x2e   :  { %p510_p4 = por %p509_p3, %p508_p2 }
  0x30   :  { %381 = vmatpush3.bf16.msra.mxu0 %v428_v3  ;;  %401 = vmatpush3.bf16.msra.mxu1 %v437_v8  ;;  %p511_p5 = pnand %p510_p4, %p504_p1 }
  0x31   :  { %382 = vmatprep.subr.bf16.mxu0 %v534_v0  ;;  %402 = vmatprep.subr.bf16.mxu1 %v534_v0 }
  0x34   :  { %383 = vmatpush3.bf16.msra.mxu0 %v429_v5  ;;  %403 = vmatpush3.bf16.msra.mxu1 %v438_v10 }
  0x35   :  { %384 = vmatprep.subr.bf16.mxu0 %v534_v0  ;;  %404 = vmatprep.subr.bf16.mxu1 %v534_v0 }
  0x38   :  { %385 = vmatpush3.bf16.msra.mxu0 %v430_v7  ;;  %405 = vmatpush3.bf16.msra.mxu1 %v439_v12 }
  0x39   :  { %386 = vmatprep.subr.bf16.mxu0 %v534_v0  ;;  %406 = vmatprep.subr.bf16.mxu1 %v534_v0 }
  0x3c   :  { %387 = vmatpush3.bf16.msra.mxu0 %v431_v9  ;;  %407 = vmatpush3.bf16.msra.mxu1 %v440_v15 }
  0x3d   :  { %388 = vmatprep.subr.bf16.mxu0 %v534_v0  ;;  %408 = vmatprep.subr.bf16.mxu1 %v534_v0 }
  0x40   :  { %389 = vmatpush3.bf16.msra.mxu0 %v432_v11  ;;  %409 = vmatpush3.bf16.msra.mxu1 %v441_v16 }
  0x41   :  { %390 = vmatprep.subr.bf16.mxu0 %v534_v0  ;;  %410 = vmatprep.subr.bf16.mxu1 %v534_v0 }
  0x44   :  { %391 = vmatpush3.bf16.msra.mxu0 %v433_v13  ;;  %411 = vmatpush3.bf16.msra.mxu1 %v442_v17 }
  0x47   :  { %393 = vmatmul.mubr.bf16.vlgmr.msra.gmra.mxu0 %v434_v14 }
 0x107   :  { %v177_v18 = vpop.f32.mrf.mxu0 }
 0x108   :  { %v200_v21 = vadd.f32 %v348_v19, %v177_v18 }
 0x109   :  { %v394_v20 = vpop.f32.mrf.mxu0 }
 0x10a   :  { %v202_v25 = vmax.f32 %v200_v21, 0.0 }
 0x10b   :  { %v180_v22 = vpop.f32.mrf.mxu0 }
 0x10c   :  { %v201_v23 = vadd.f32 %v348_v19, %v180_v22 }
 0x10d   :  { %v395_v24 = vpop.f32.mrf.mxu0 }
 0x10e   :  { %v203_v26 = vmax.f32 %v201_v23, 0.0 }
 0x110   :  { %v204_v27 = vpack.c.bf16 %v203_v26, %v202_v25 }
 0x112   :  { %413 = vmatmul.mubr.bf16.vlgmr.msra.gmra.mxu1 %v204_v27 }
 0x1d2   :  { %v310_v29 = vpop.f32.mrf.mxu1 }
 0x1d3   :  { %v311_v30 = vadd.f32 %v349_v28, %v310_v29 }
 0x1d4   :  { %v414_v31 = vpop.f32.mrf.mxu1 }
 0x1d5   :  { %v317_v32 = vmax.f32 %v311_v30, 0.0 }
 0x1d6   :  { %v313_v33 = vpop.f32.mrf.mxu1 }
 0x1d7   :  { %319 = vst [vmem:[#allocation9] sm:$0xff] %v317_v32  ;;  %v314_v34 = vadd.f32 %v349_v28, %v313_v33 }
 0x1d8   :  { %v415_v35 = vpop.f32.mrf.mxu1 }
 0x1d9   :  { %v318_v36 = vmax.f32 %v314_v34, 0.0 }
 0x1db   :  { %320 = vst [vmem:[#allocation9 + $0x8] sm:$0xff] %v318_v36 }
 0x1dc   :  { %514 = shalt.err (!%p511_p5)
}
 0x1dd   :  { %s537_s4 = smov 128   ;;  %s538_s13 = smov 8  }
 0x1de   :  { %332 = dma.vmem_to_hbm [thread:$0]  %s327_s12, 256, %s592_s5, [#allocation5], %s537_s4, %s537_s4, %s538_s13  }
 0x1df   :  { %527 = dma.done.wait [#allocation5], 256  }
 0x1e0   :  { %528 = vsyncadd [#allocation5], 4294967040 }
 0x1e1   :  { %336 = vsyncpa [#allocation4], 1 }
 0x1e2   :  { %337 = vsyncpa [#allocation7], 1 }
 0x1e3   :  { %338 = vsyncpa [#allocation5], 1 }

// kernel: tpu_custom_call.1
= control target key start
LH: loop header
LB: loop body
LE: loop exit
PB: predicated region body
PF: predicated region fallthrough
CT: control target
= control target key end

     0   :  { %10 = vsyncpa [#allocation4], 0  ;;  %s587_s0 = inlined_call_operand.hbm [shape: bf16[16,128], index: 0, kind: input, shape index: {}]   ;;  %s588_s1 = inlined_call_operand.hbm [shape: bf16[128,128], index: 1, kind: input, shape index: {}]   ;;  %s589_s2 = inlined_call_operand.vmem [shape: f32[1,128], index: 2, kind: input, shape index: {}]   ;;  %s590_s3 = inlined_call_operand.hbm [shape: bf16[128,128], index: 3, kind: input, shape index: {}]   ;;  %s591_s4 = inlined_call_operand.vmem [shape: f32[1,128], index: 4, kind: input, shape index: {}]   ;;  %s592_s5 = inlined_call_operand.hbm [shape: f32[16,128], index: 5, kind: output, shape index: {}]  }
   0x1   :  { %11 = vsyncpa [#allocation7], 0 }
   0x2   :  { %12 = vsyncpa [#allocation5], 0  ;;  %s529_s18 = smov [#allocation6]   ;;  %s530_s20 = smov [#allocation3]  }
   0x3   :  { %s30_s19 = sshll.u32 %s529_s18, 4  ;;  %s18_s21 = sshll.u32 %s530_s20, 4  ;;  %s31_s19 = int_to_ptr.vmem [resolvable:$true] %s30_s19  ;;  %s19_s21 = int_to_ptr.vmem [resolvable:$true] %s18_s21 }
   0x4   :  { %s451_s22 = scalar_lea.vmem %s31_s19, 1024  ;;  %p456_p1 = scmp.lt.s32.totalorder %s31_s19, %s31_s19 }
   0x5   :  { %p452_p0 = scmp.ne.s32.totalorder %s31_s19, %s451_s22  ;;  %p457_p2 = scmp.lt.s32.totalorder %s451_s22, %s451_s22 }
   0x7   :  { %p458_p3 = por %p457_p2, %p456_p1 }
   0x9   :  { %p459_p4 = pnand %p458_p3, %p452_p0 }
   0xb   :  { %462 = shalt.err (!%p459_p4)
}
   0xc   :  { %s531_s23 = smov 64   ;;  %s532_s24 = smov 4  }
   0xd   :  { %36 = dma.hbm_to_vmem [thread:$0]  %s588_s1, 1024, %s31_s19, [#allocation7], %s531_s23, %s531_s23, %s532_s24  }
   0xe   :  { %s471_s27 = scalar_lea.vmem %s19_s21, 128  ;;  %p476_p6 = scmp.lt.s32.totalorder %s19_s21, %s19_s21 }
   0xf   :  { %p472_p5 = scmp.ne.s32.totalorder %s19_s21, %s471_s27  ;;  %p477_p7 = scmp.lt.s32.totalorder %s471_s27, %s471_s27 }
  0x11   :  { %p478_p8 = por %p477_p7, %p476_p6 }
  0x13   :  { %p479_p9 = pnand %p478_p8, %p472_p5 }
  0x15   :  { %482 = shalt.err (!%p479_p9)
}
  0x16   :  { %24 = dma.hbm_to_vmem [thread:$0]  %s587_s0, 128, %s19_s21, [#allocation4], %s531_s23, %s531_s23, %s532_s24  }
  0x17   :  { %s533_s30 = smov [#allocation8]  }
  0x18   :  { %s44_s6 = sshll.u32 %s533_s30, 4  ;;  %s45_s6 = int_to_ptr.vmem [resolvable:$true] %s44_s6 }
  0x19   :  { %s491_s7 = scalar_lea.vmem %s45_s6, 1024  ;;  %p496_p11 = scmp.lt.s32.totalorder %s45_s6, %s45_s6 }
  0x1a   :  { %p492_p10 = scmp.ne.s32.totalorder %s45_s6, %s491_s7  ;;  %p497_p12 = scmp.lt.s32.totalorder %s491_s7, %s491_s7 }
  0x1c   :  { %p498_p13 = por %p497_p12, %p496_p11 }
  0x1e   :  { %p499_p0 = pnand %p498_p13, %p492_p10 }
  0x20   :  { %502 = shalt.err (!%p499_p0)
}
  0x21   :  { %50 = dma.hbm_to_vmem [thread:$0]  %s590_s3, 1024, %s45_s6, [#allocation7], %s531_s23, %s531_s23, %s532_s24  }
  0x22   :  { %523 = dma.done.wait [#allocation4], 128  }
  0x23   :  { %524 = vsyncadd [#allocation4], 4294967168 }
  0x24   :  { %525 = dma.done.wait [#allocation7], 2048  }
  0x25   :  { %526 = vsyncadd [#allocation7], 4294965248  ;;  %v534_v0 = vmov 0.0   ;;  %vm535_vm0 = vmmov 0   ;;  %v426_v1 = vld [vmem:[#allocation6 + $0x38] sm:$0xff]   ;;  %v427_v2 = vld [vmem:[#allocation6 + $0x30] sm:$0xff]  }
  0x26   :  { %376 = vmatprep.subr.bf16.mxu0 %v534_v0  ;;  %392 = vmatprep.mubr.msk.bf16.mxu0 %vm535_vm0, %v534_v0  ;;  %v428_v3 = vld [vmem:[#allocation6 + $0x28] sm:$0xff]   ;;  %v435_v4 = vld [vmem:[#allocation8 + $0x38] sm:$0xff]   ;;  %v429_v5 = vld [vmem:[#allocation6 + $0x20] sm:$0xff]   ;;  %s536_s11 = smov [#allocation9]  }
  0x27   :  { %396 = vmatprep.subr.bf16.mxu1 %v534_v0  ;;  %412 = vmatprep.mubr.msk.bf16.mxu1 %vm535_vm0, %v534_v0  ;;  %v436_v6 = vld [vmem:[#allocation8 + $0x30] sm:$0xff]   ;;  %v430_v7 = vld [vmem:[#allocation6 + $0x18] sm:$0xff]   ;;  %v437_v8 = vld [vmem:[#allocation8 + $0x28] sm:$0xff]   ;;  %s326_s12 = sshll.u32 %s536_s11, 4  ;;  %s327_s12 = int_to_ptr.vmem [resolvable:$true] %s326_s12 }
  0x28   :  { %377 = vmatpush3.bf16.msra.mxu0 %v426_v1  ;;  %397 = vmatpush3.bf16.msra.mxu1 %v435_v4  ;;  %v431_v9 = vld [vmem:[#allocation6 + $0x10] sm:$0xff]   ;;  %v438_v10 = vld [vmem:[#allocation8 + $0x20] sm:$0xff]   ;;  %v432_v11 = vld [vmem:[#allocation6 + $0x8] sm:$0xff]   ;;  %p508_p2 = scmp.lt.s32.totalorder %s327_s12, %s327_s12 }
  0x29   :  { %378 = vmatprep.subr.bf16.mxu0 %v534_v0  ;;  %398 = vmatprep.subr.bf16.mxu1 %v534_v0  ;;  %v439_v12 = vld [vmem:[#allocation8 + $0x18] sm:$0xff]   ;;  %v433_v13 = vld [vmem:[#allocation6] sm:$0xff]   ;;  %v440_v15 = vld [vmem:[#allocation8 + $0x10] sm:$0xff]  }
  0x2a   :  { %v434_v14 = vld [vmem:[#allocation3] sm:$0xff]   ;;  %v441_v16 = vld [vmem:[#allocation8 + $0x8] sm:$0xff]   ;;  %v442_v17 = vld [vmem:[#allocation8] sm:$0xff]  }
  0x2b   :  { %v348_v19 = vld [vmem:[%s589_s2] ss:$0 sm:$0xff]  ;;  %s503_s2 = scalar_lea.vmem %s327_s12, 256 }
  0x2c   :  { %379 = vmatpush3.bf16.msra.mxu0 %v427_v2  ;;  %399 = vmatpush3.bf16.msra.mxu1 %v436_v6  ;;  %v349_v28 = vld [vmem:[%s591_s4] ss:$0 sm:$0xff]  ;;  %p504_p1 = scmp.ne.s32.totalorder %s327_s12, %s503_s2  ;;  %p509_p3 = scmp.lt.s32.totalorder %s503_s2, %s503_s2 }
  0x2d   :  { %380 = vmatprep.subr.bf16.mxu0 %v534_v0  ;;  %400 = vmatprep.subr.bf16.mxu1 %v534_v0 }
  0x2e   :  { %p510_p4 = por %p509_p3, %p508_p2 }
  0x30   :  { %381 = vmatpush3.bf16.msra.mxu0 %v428_v3  ;;  %401 = vmatpush3.bf16.msra.mxu1 %v437_v8  ;;  %p511_p5 = pnand %p510_p4, %p504_p1 }
  0x31   :  { %382 = vmatprep.subr.bf16.mxu0 %v534_v0  ;;  %402 = vmatprep.subr.bf16.mxu1 %v534_v0 }
  0x34   :  { %383 = vmatpush3.bf16.msra.mxu0 %v429_v5  ;;  %403 = vmatpush3.bf16.msra.mxu1 %v438_v10 }
  0x35   :  { %384 = vmatprep.subr.bf16.mxu0 %v534_v0  ;;  %404 = vmatprep.subr.bf16.mxu1 %v534_v0 }
  0x38   :  { %385 = vmatpush3.bf16.msra.mxu0 %v430_v7  ;;  %405 = vmatpush3.bf16.msra.mxu1 %v439_v12 }
  0x39   :  { %386 = vmatprep.subr.bf16.mxu0 %v534_v0  ;;  %406 = vmatprep.subr.bf16.mxu1 %v534_v0 }
  0x3c   :  { %387 = vmatpush3.bf16.msra.mxu0 %v431_v9  ;;  %407 = vmatpush3.bf16.msra.mxu1 %v440_v15 }
  0x3d   :  { %388 = vmatprep.subr.bf16.mxu0 %v534_v0  ;;  %408 = vmatprep.subr.bf16.mxu1 %v534_v0 }
  0x40   :  { %389 = vmatpush3.bf16.msra.mxu0 %v432_v11  ;;  %409 = vmatpush3.bf16.msra.mxu1 %v441_v16 }
  0x41   :  { %390 = vmatprep.subr.bf16.mxu0 %v534_v0  ;;  %410 = vmatprep.subr.bf16.mxu1 %v534_v0 }
  0x44   :  { %391 = vmatpush3.bf16.msra.mxu0 %v433_v13  ;;  %411 = vmatpush3.bf16.msra.mxu1 %v442_v17 }
  0x47   :  { %393 = vmatmul.mubr.bf16.vlgmr.msra.gmra.mxu0 %v434_v14 }
 0x107   :  { %v177_v18 = vpop.f32.mrf.mxu0 }
 0x108   :  { %v200_v21 = vadd.f32 %v348_v19, %v177_v18 }
 0x109   :  { %v394_v20 = vpop.f32.mrf.mxu0 }
 0x10a   :  { %v202_v25 = vmax.f32 %v200_v21, 0.0 }
 0x10b   :  { %v180_v22 = vpop.f32.mrf.mxu0 }
 0x10c   :  { %v201_v23 = vadd.f32 %v348_v19, %v180_v22 }
 0x10d   :  { %v395_v24 = vpop.f32.mrf.mxu0 }
 0x10e   :  { %v203_v26 = vmax.f32 %v201_v23, 0.0 }
 0x110   :  { %v204_v27 = vpack.c.bf16 %v203_v26, %v202_v25 }
 0x112   :  { %413 = vmatmul.mubr.bf16.vlgmr.msra.gmra.mxu1 %v204_v27 }
 0x1d2   :  { %v310_v29 = vpop.f32.mrf.mxu1 }
 0x1d3   :  { %v311_v30 = vadd.f32 %v349_v28, %v310_v29 }
 0x1d4   :  { %v414_v31 = vpop.f32.mrf.mxu1 }
 0x1d5   :  { %v317_v32 = vmax.f32 %v311_v30, 0.0 }
 0x1d6   :  { %v313_v33 = vpop.f32.mrf.mxu1 }
 0x1d7   :  { %319 = vst [vmem:[#allocation9] sm:$0xff] %v317_v32  ;;  %v314_v34 = vadd.f32 %v349_v28, %v313_v33 }
 0x1d8   :  { %v415_v35 = vpop.f32.mrf.mxu1 }
 0x1d9   :  { %v318_v36 = vmax.f32 %v314_v34, 0.0 }
 0x1db   :  { %320 = vst [vmem:[#allocation9 + $0x8] sm:$0xff] %v318_v36 }
 0x1dc   :  { %514 = shalt.err (!%p511_p5)
}
 0x1dd   :  { %s537_s4 = smov 128   ;;  %s538_s13 = smov 8  }
 0x1de   :  { %332 = dma.vmem_to_hbm [thread:$0]  %s327_s12, 256, %s592_s5, [#allocation5], %s537_s4, %s537_s4, %s538_s13  }
 0x1df   :  { %527 = dma.done.wait [#allocation5], 256  }
 0x1e0   :  { %528 = vsyncadd [#allocation5], 4294967040 }
 0x1e1   :  { %336 = vsyncpa [#allocation4], 1 }
 0x1e2   :  { %337 = vsyncpa [#allocation7], 1 }
 0x1e3   :  { %338 = vsyncpa [#allocation5], 1 }

</bundles_post_ra>
